<compile_context>
chip_gen: v6e
topology: v6e:2x2x1
jax: 0.10.0
libtpu: 0.0.40
codegen_flags: <defaults>
</compile_context>

<pallas_src>
import functools
import math

import jax
import jax.numpy as jnp
from jax.experimental import pallas as pl
from jax.experimental.pallas import tpu as pltpu


# --------------------------------- kernel ------------------------------------

def _conv_band_kernel(x_ref, w_ref, o_ref, *, kh_taps, ho, stride_h):
    """One image per grid step.

    x_ref : (Hp, Wp*Cin)        pre-padded input slab (bf16)
    w_ref : (KH, Wp*Cin, Wo*Cout) banded weight matrices (bf16), VMEM-resident
    o_ref : (Ho, Wo*Cout)       output slab (f32)
    """
    x = x_ref[...]                                        # single wide load
    acc = jnp.zeros(o_ref.shape, jnp.float32)
    for kh in range(kh_taps):                             # KH = 3 -> unrolled
        if stride_h == 1:
            a = x[kh:kh + ho, :]                          # static sublane slice
        else:
            a = x[kh:kh + (ho - 1) * stride_h + 1:stride_h, :]
        # (Ho, Wp*Cin) @ (Wp*Cin, Wo*Cout) on the MXU, f32 accumulation.
        acc = acc + jnp.dot(a, w_ref[kh], preferred_element_type=jnp.float32)
    o_ref[...] = acc                                      # lane-dense store


# ------------------------------ JAX wrapper -----------------------------------

def basic_conv2d(x_nchw, weight_oihw, *, stride=(1, 1), padding=(1, 1),
                 mxu_dtype=jnp.bfloat16):
    """Forward pass of BasicConv2d: y = conv2d(x, w, stride, padding, bias=None)."""
    sh, sw = stride
    ph, pw = padding
    n, cin, h, w = x_nchw.shape
    cout, cin_w, kh, kw = weight_oihw.shape
    assert cin == cin_w, "in_channels mismatch"

    hp, wp = h + 2 * ph, w + 2 * pw
    ho = (hp - kh) // sh + 1
    wo = (wp - kw) // sw + 1

    # ---- input: NCHW -> NHWC, zero-pad once, flatten (W, C) into one slab axis
    x = jnp.transpose(x_nchw, (0, 2, 3, 1))                       # (N, H, W, Cin)
    x = jnp.pad(x, ((0, 0), (ph, ph), (pw, pw), (0, 0)))          # (N, Hp, Wp, Cin)
    x_slab = x.reshape(n, hp, wp * cin).astype(mxu_dtype)         # (N, Hp, Wp*Cin)

    # ---- weight: build KH banded (Toeplitz) matrices B[kh] of shape
    #      (Wp*Cin, Wo*Cout) with B[kh][w*Cin+ci, wo*Cout+co] = W[kh, w-wo*sw, ci, co]
    wk = jnp.transpose(weight_oihw, (2, 3, 1, 0))                 # (KH, KW, Cin, Cout)
    w_pos = jnp.arange(wp)
    wo_pos = jnp.arange(wo)
    kw_pos = jnp.arange(kw)
    sel = (w_pos[None, :, None]
           == (wo_pos[None, None, :] * sw + kw_pos[:, None, None])).astype(wk.dtype)
    # sel: (KW, Wp, Wo);  wk: (KH, KW, Cin, Cout)  ->  (KH, Wp, Cin, Wo, Cout)
    w_band = jnp.einsum("qwo,kqic->kwioc", sel, wk)
    w_band = w_band.reshape(kh, wp * cin, wo * cout).astype(mxu_dtype)

    kernel = functools.partial(_conv_band_kernel, kh_taps=kh, ho=ho, stride_h=sh)

    y_slab = pl.pallas_call(
        kernel,
        grid=(n,),
        in_specs=[
            pl.BlockSpec((None, hp, wp * cin), lambda i: (i, 0, 0)),   # one image
            pl.BlockSpec((kh, wp * cin, wo * cout), lambda i: (0, 0, 0)),  # resident
        ],
        out_specs=pl.BlockSpec((None, ho, wo * cout), lambda i: (i, 0, 0)),
        out_shape=jax.ShapeDtypeStruct((n, ho, wo * cout), jnp.float32),
        compiler_params=pltpu.CompilerParams(
            dimension_semantics=("parallel",),       # megacore sharding on v7x
            vmem_limit_bytes=32 * 1024 * 1024,       # safe on v5e/v6e/v7x
        ),
    )(x_slab, w_band)

    # slab -> NHWC -> NCHW (pure layout plumbing outside the kernel)
    y = y_slab.reshape(n, ho, wo, cout)
    return jnp.transpose(y, (0, 3, 1, 2))


# ---------------------------------- demo --------------------------------------

if __name__ == "__main__":
    # Small shapes consistent with BasicConv2d(in, out, kernel=3, stride=1, pad=1).
    N, CIN, H, W = 2, 16, 16, 16
    COUT, KH, KW = 32, 3, 3
    STRIDE, PADDING = (1, 1), (1, 1)

    key = jax.random.PRNGKey(0)
    kx, kw_key = jax.random.split(key)
    x = jax.random.normal(kx, (N, CIN, H, W), jnp.float32)
    bound = 1.0 / math.sqrt(CIN * KH * KW)                 # PyTorch conv init range
    weight = jax.random.uniform(kw_key, (COUT, CIN, KH, KW), jnp.float32,
                                -bound, bound)

    fwd = jax.jit(lambda xx, ww: basic_conv2d(xx, ww, stride=STRIDE, padding=PADDING))
    out = fwd(x, weight)
    jax.block_until_ready(out)

    assert out.shape == (N, COUT, H, W)
    assert bool(jnp.all(jnp.isfinite(out)))

    # Reference on the same bf16-rounded operands (f32 accumulation), so the
    # comparison isolates kernel correctness rather than operand rounding.
    ref = jax.lax.conv_general_dilated(
        x.astype(jnp.bfloat16), weight.astype(jnp.bfloat16),
        window_strides=STRIDE, padding=[(1, 1), (1, 1)],
        dimension_numbers=("NCHW", "OIHW", "NCHW"),
        preferred_element_type=jnp.float32)
    max_err = float(jnp.max(jnp.abs(out - ref)))
    assert max_err < 1e-2, f"max abs err vs reference conv: {max_err}"

    print("KERNEL_OK")
</pallas_src>

<mosaic_0001>
module attributes {stable_mosaic.version = 11 : i64} {
  func.func @_conv_band_kernel(%arg0: i32, %arg1: memref<1x18x288xbf16, #tpu.memory_space<vmem>>, %arg2: memref<3x288x512xbf16, #tpu.memory_space<vmem>>, %arg3: memref<1x16x512xf32, #tpu.memory_space<vmem>>) attributes {dimension_semantics = [#tpu.dimension_semantics<parallel>], iteration_bounds = array<i64: 2>, scalar_prefetch = 0 : i64, scratch_operands = 0 : i64, tpu.core_type = #tpu.core_type<tc>, window_params = [{transform_indices = @transform_0, window_bounds = array<i64: 1, 18, 288>}, {pipeline_mode = #tpu.pipeline_mode<synchronous>, transform_indices = @transform_1, window_bounds = array<i64: 3, 288, 512>}, {transform_indices = @transform_2, window_bounds = array<i64: 1, 16, 512>}]} {
    %c0 = arith.constant 0 : index
    %c0_0 = arith.constant 0 : index
    %c0_1 = arith.constant 0 : index
    %0 = vector.load %arg1[%c0, %c0_0, %c0_1] : memref<1x18x288xbf16, #tpu.memory_space<vmem>>, vector<1x18x288xbf16>
    %1 = vector.shape_cast %0 : vector<1x18x288xbf16> to vector<18x288xbf16>
    %cst = arith.constant 0.000000e+00 : f32
    %2 = vector.broadcast %cst : f32 to vector<16x512xf32>
    %3 = vector.extract_strided_slice %1 {offsets = [0, 0], sizes = [16, 288], strides = [1, 1]} : vector<18x288xbf16> to vector<16x288xbf16>
    %c0_2 = arith.constant 0 : index
    %c0_3 = arith.constant 0 : index
    %c0_4 = arith.constant 0 : index
    %4 = vector.load %arg2[%c0_2, %c0_3, %c0_4] : memref<3x288x512xbf16, #tpu.memory_space<vmem>>, vector<1x288x512xbf16>
    %5 = vector.shape_cast %4 : vector<1x288x512xbf16> to vector<288x512xbf16>
    %cst_5 = arith.constant dense<0.000000e+00> : vector<16x512xf32>
    %6 = tpu.matmul %3, %5, %cst_5 {dimension_numbers = #tpu.dot_dimension_numbers<[1], [0], [0], [1], [0, 0, 1, 1], [], []>} : vector<16x288xbf16>, vector<288x512xbf16>, vector<16x512xf32> -> vector<16x512xf32>
    %7 = arith.addf %2, %6 : vector<16x512xf32>
    %8 = vector.extract_strided_slice %1 {offsets = [1, 0], sizes = [16, 288], strides = [1, 1]} : vector<18x288xbf16> to vector<16x288xbf16>
    %c1 = arith.constant 1 : index
    %c0_6 = arith.constant 0 : index
    %c0_7 = arith.constant 0 : index
    %9 = vector.load %arg2[%c1, %c0_6, %c0_7] : memref<3x288x512xbf16, #tpu.memory_space<vmem>>, vector<1x288x512xbf16>
    %10 = vector.shape_cast %9 : vector<1x288x512xbf16> to vector<288x512xbf16>
    %cst_8 = arith.constant dense<0.000000e+00> : vector<16x512xf32>
    %11 = tpu.matmul %8, %10, %cst_8 {dimension_numbers = #tpu.dot_dimension_numbers<[1], [0], [0], [1], [0, 0, 1, 1], [], []>} : vector<16x288xbf16>, vector<288x512xbf16>, vector<16x512xf32> -> vector<16x512xf32>
    %12 = arith.addf %7, %11 : vector<16x512xf32>
    %13 = vector.extract_strided_slice %1 {offsets = [2, 0], sizes = [16, 288], strides = [1, 1]} : vector<18x288xbf16> to vector<16x288xbf16>
    %c2 = arith.constant 2 : index
    %c0_9 = arith.constant 0 : index
    %c0_10 = arith.constant 0 : index
    %14 = vector.load %arg2[%c2, %c0_9, %c0_10] : memref<3x288x512xbf16, #tpu.memory_space<vmem>>, vector<1x288x512xbf16>
    %15 = vector.shape_cast %14 : vector<1x288x512xbf16> to vector<288x512xbf16>
    %cst_11 = arith.constant dense<0.000000e+00> : vector<16x512xf32>
    %16 = tpu.matmul %13, %15, %cst_11 {dimension_numbers = #tpu.dot_dimension_numbers<[1], [0], [0], [1], [0, 0, 1, 1], [], []>} : vector<16x288xbf16>, vector<288x512xbf16>, vector<16x512xf32> -> vector<16x512xf32>
    %17 = arith.addf %12, %16 : vector<16x512xf32>
    %c0_12 = arith.constant 0 : index
    %c0_13 = arith.constant 0 : index
    %c0_14 = arith.constant 0 : index
    %18 = vector.load %arg3[%c0_12, %c0_13, %c0_14] : memref<1x16x512xf32, #tpu.memory_space<vmem>>, vector<1x16x512xf32>
    %19 = vector.shape_cast %18 : vector<1x16x512xf32> to vector<16x512xf32>
    %20 = vector.shape_cast %17 : vector<16x512xf32> to vector<1x16x512xf32>
    tpu.vector_store %arg3[%c0_12, %c0_13, %c0_14], %20 {strides = array<i32>} : memref<1x16x512xf32, #tpu.memory_space<vmem>>, vector<1x16x512xf32>,
    return
  }
  func.func @transform_0(%arg0: i32) -> (i32, i32, i32) {
    %c0_i32 = arith.constant 0 : i32
    %c0_i32_0 = arith.constant 0 : i32
    %c0_i32_1 = arith.constant 0 : i32
    return %arg0, %c0_i32, %c0_i32_0 : i32, i32, i32
  }
  func.func @transform_1(%arg0: i32) -> (i32, i32, i32) {
    %c0_i32 = arith.constant 0 : i32
    %c0_i32_0 = arith.constant 0 : i32
    %c0_i32_1 = arith.constant 0 : i32
    %c0_i32_2 = arith.constant 0 : i32
    return %c0_i32, %c0_i32_0, %c0_i32_1 : i32, i32, i32
  }
  func.func @transform_2(%arg0: i32) -> (i32, i32, i32) {
    %c0_i32 = arith.constant 0 : i32
    %c0_i32_0 = arith.constant 0 : i32
    %c0_i32_1 = arith.constant 0 : i32
    return %arg0, %c0_i32, %c0_i32_0 : i32, i32, i32
  }
}

</mosaic_0001>

<bundles_post_ra>
// kernel: _lambda_.1
= control target key start
LH: loop header
LB: loop body
LE: loop exit
PB: predicated region body
PF: predicated region fallthrough
CT: control target
= control target key end

     0   :  { %s2869_s9 = smov 0   ;;  %s3614_s0 = inlined_call_operand.vmem [shape: bf16[2,18,288], index: 0, kind: input, shape index: {}]   ;;  %s3615_s1 = inlined_call_operand.vmem [shape: bf16[3,288,512], index: 1, kind: input, shape index: {}]   ;;  %s3616_s2 = inlined_call_operand.vmem [shape: f32[2,16,512], index: 2, kind: output, shape index: {}]  }
   0x1 LB: > { %s2119_s10 = sadd.s32 4294967295, %s2851_s9   ;;  %p2123_p0 = scmp.ge.s32.totalorder %s2851_s9, 1  ;;  %s2851_s9 = sphi %s2869_s9, %s12_s9  }
   0x2   : > { %p112_p1 = scmp.lt.s32.totalorder %s2851_s9, 3 }
   0x4   : > { %p113_p2 = pnand %p2123_p0, %p112_p1 }
   0x5   : > { %p134_p3 = scmp.lt.s32.totalorder (!%p113_p2), %s2119_s10, 1 }
   0x6   : > { %116 = sbr.rel (%p113_p2) target bundleno = 437 (0x1b5), region = 28 }
   0xb   : > { %v2512_v0 = vld [vmem:[%s3615_s1 + $0x324] ss:$16 sps:$4 sm:$0xff]   ;;  %v2514_v1 = vld [vmem:[%s3615_s1 + $0x320] ss:$16 sps:$4 sm:$0xff]   ;;  %v2853_v2 = vmov 0   ;;  %s3618_s10 = smov (!%p134_p3, %s2119_s10), 1 }
   0xc   : > { %795 = vmatprep.mubr.bf16.mxu1 %v2853_v2  ;;  %720 = vmatprep.subr.bf16.mxu0 %v2512_v0  ;;  %v2515_v3 = vld [vmem:[%s3615_s1 + $0x304] ss:$16 sps:$4 sm:$0xff]   ;;  %v2517_v4 = vld [vmem:[%s3615_s1 + $0x300] ss:$16 sps:$4 sm:$0xff]   ;;  %s2502_s25 = smul.u32 36, %s3618_s10  ;;  %vm716_vm1 = vcmask 261120  }
   0xd   : > { %721 = vmatpush1.bf16.msra.mxu0 %v2514_v1  ;;  %v2518_v5 = vld [vmem:[%s3615_s1 + $0x464] ss:$16 sps:$4 sm:$0xff]   ;;  %v2520_v6 = vld [vmem:[%s3615_s1 + $0x460] ss:$16 sps:$4 sm:$0xff]   ;;  %v2532_v12 = vld [vmem:[%s3615_s1 + $0x32c] ss:$16 sps:$4 sm:$0xff]  }
   0xe   : > { %722 = vmatprep.subr.bf16.mxu0 %v2515_v3  ;;  %v2521_v7 = vld [vmem:[%s3615_s1 + $0x2e4] ss:$16 sps:$4 sm:$0xff]   ;;  %775 = vmatprep.subr.bf16.mxu1 %v2518_v5  ;;  %v2526_v9 = vld [vmem:[%s3615_s1 + $0x440] ss:$16 sps:$4 sm:$0xff]   ;;  %s2914_s6 = scalar_lea.vmem %s3614_s0, %s2502_s25  ;;  %v2530_v20 = vld [vmem:[%s3615_s1 + $0x328] ss:$16 sps:$4 sm:$0xff]  }
   0xf   : > { %776 = vmatpush1.bf16.msra.mxu1 %v2520_v6  ;;  %v2524_v8 = vld [vmem:[%s3615_s1 + $0x444] ss:$16 sps:$4 sm:$0xff]   ;;  %v2523_v10 = vld [vmem:[%s3615_s1 + $0x2e0] ss:$16 sps:$4 sm:$0xff]   ;;  %vm317_vm0 = vsmask.f32 7424 }
  0x10   : > { %777 = vmatprep.subr.bf16.mxu1 %v2524_v8  ;;  %v2527_v11 = vld [vmem:[%s3615_s1 + $0x2c4] ss:$16 sps:$4 sm:$0xff]   ;;  %v2529_v14 = vld [vmem:[%s3615_s1 + $0x2c0] ss:$16 sps:$4 sm:$0xff]   ;;  %v2540_v26 = vld [vmem:[%s3615_s1 + $0x30c] ss:$16 sps:$4 sm:$0xff]  }
  0x11   : > { %723 = vmatpush1.bf16.msra.mxu0 %v2517_v4  ;;  %v2923_v13 = vld [vmem:[%s2914_s6 + $0x8] ss:$12 sps:$4 sm:$0xff]   ;;  %v2534_v15 = vld [vmem:[%s2914_s6 + $0x20] ss:$0 sps:$4 sm:$0x11]   ;;  %vm1501_vm2 = vcmask 1046528  }
  0x12   : > { %724 = vmatprep.subr.bf16.mxu0 %v2521_v7  ;;  %v343_v16 = vshrl.u32 %v2923_v13, 16  ;;  %v345_v17 = vshll.u32 %v2923_v13, 16  ;;  %v2535_v18 = vld [vmem:[%s3615_s1 + $0x2a4] ss:$16 sps:$4 sm:$0xff]   ;;  %v350_v19 = vshll.u32 %v2534_v15, 16  ;;  %s2501_s16 = sshll.u32 %s3618_s10, 6 }
  0x13   : > { %778 = vmatpush1.bf16.msra.mxu1 %v2526_v9  ;;  %v2537_v23 = vld [vmem:[%s3615_s1 + $0x2a0] ss:$16 sps:$4 sm:$0xff]   ;;  %v2541_v25 = vld [vmem:[%s3615_s1 + $0x284] ss:$16 sps:$4 sm:$0xff]   ;;  %v2538_v28 = vld [vmem:[%s3615_s1 + $0x308] ss:$16 sps:$4 sm:$0xff]   ;;  %s3601_s19 = scalar_lea.vmem %s3616_s2, %s2501_s16 }
  0x14   : > { %806 = vmatprep.subr.bf16.mxu1 %v2532_v12  ;;  %v347_v21 = vrot.slane %v345_v17, 1  ;;  %v352_v22 = vrot.slane %v350_v19, 1  ;;  %v2543_v29 = vld [vmem:[%s3615_s1 + $0x280] ss:$16 sps:$4 sm:$0xff]   ;;  %v2547_v30 = vld [vmem:[%s3615_s1 + $0x264] ss:$16 sps:$4 sm:$0xff]  }
  0x15   : > { %725 = vmatpush1.bf16.msra.mxu0 %v2523_v10  ;;  %v2546_v31 = vld [vmem:[%s3615_s1 + $0x2ec] ss:$16 sps:$4 sm:$0xff]   ;;  %v2544_v32 = vld [vmem:[%s3615_s1 + $0x2e8] ss:$16 sps:$4 sm:$0xff]   ;;  %v2549_v33 = vld [vmem:[%s3615_s1 + $0x260] ss:$16 sps:$4 sm:$0xff]  }
  0x16   : > { %726 = vmatprep.subr.bf16.mxu0 %v2527_v11  ;;  %v348_v24 = vor.u32 %v347_v21, %v343_v16  ;;  %v2553_v34 = vld [vmem:[%s3615_s1 + $0x244] ss:$16 sps:$4 sm:$0xff]   ;;  %v2552_v35 = vld [vmem:[%s3615_s1 + $0x2cc] ss:$16 sps:$4 sm:$0xff]   ;;  %v2550_v36 = vld [vmem:[%s3615_s1 + $0x2c8] ss:$16 sps:$4 sm:$0xff]  }
  0x17   : > { %v2555_v37 = vld [vmem:[%s3615_s1 + $0x240] ss:$16 sps:$4 sm:$0xff]   ;;  %v2559_v38 = vld [vmem:[%s3615_s1 + $0x424] ss:$16 sps:$4 sm:$0xff]   ;;  %v2558_v39 = vld [vmem:[%s3615_s1 + $0x2ac] ss:$16 sps:$4 sm:$0xff]  }
  0x18   : > { %v2947_v27 = vsel %vm317_vm0, %v348_v24, %v352_v22  ;;  %v2556_v40 = vld [vmem:[%s3615_s1 + $0x2a8] ss:$16 sps:$4 sm:$0xff]   ;;  %v2561_v41 = vld [vmem:[%s3615_s1 + $0x420] ss:$16 sps:$4 sm:$0xff]   ;;  %v2565_v42 = vld [vmem:[%s3615_s1 + $0x404] ss:$16 sps:$4 sm:$0xff]  }
  0x19   : > { %727 = vmatpush1.bf16.msra.mxu0 %v2529_v14  ;;  %2277 = vmatmul.mubr.msk.bf16.vlgmr.msra.gmra.mxu1 %vm716_vm1, %v2947_v27  ;;  %v2564_v43 = vld [vmem:[%s3615_s1 + $0x28c] ss:$16 sps:$4 sm:$0xff]   ;;  %v2562_v44 = vld [vmem:[%s3615_s1 + $0x288] ss:$16 sps:$4 sm:$0xff]   ;;  %v2567_v45 = vld [vmem:[%s3615_s1 + $0x400] ss:$16 sps:$4 sm:$0xff]  }
  0x1a   : > { %728 = vmatprep.subr.bf16.mxu0 %v2535_v18  ;;  %807 = vmatpush1.bf16.msra.mxu1 %v2530_v20  ;;  %v2571_v46 = vld [vmem:[%s3615_s1 + $0x3e4] ss:$16 sps:$4 sm:$0xff]   ;;  %v2570_v47 = vld [vmem:[%s3615_s1 + $0x26c] ss:$16 sps:$4 sm:$0xff]   ;;  %v2568_v48 = vld [vmem:[%s3615_s1 + $0x268] ss:$16 sps:$4 sm:$0xff]  }
  0x1b   : > { %808 = vmatprep.subr.bf16.mxu1 %v2540_v26  ;;  %v2573_v49 = vld [vmem:[%s3615_s1 + $0x3e0] ss:$16 sps:$4 sm:$0xff]   ;;  %v2577_v50 = vld [vmem:[%s3615_s1 + $0x3c4] ss:$16 sps:$4 sm:$0xff]   ;;  %v2576_v51 = vld [vmem:[%s3615_s1 + $0x24c] ss:$16 sps:$4 sm:$0xff]  }
  0x1c   : > { %v2574_v52 = vld [vmem:[%s3615_s1 + $0x248] ss:$16 sps:$4 sm:$0xff]   ;;  %v2579_v53 = vld [vmem:[%s3615_s1 + $0x3c0] ss:$16 sps:$4 sm:$0xff]   ;;  %v2583_v55 = vld [vmem:[%s3615_s1 + $0x3a4] ss:$16 sps:$4 sm:$0xff]  }
  0x1d   : > { %729 = vmatpush1.bf16.msra.mxu0 %v2537_v23  ;;  %v149_v54 = vld [vmem:[%s2914_s6 + $0x18] sm:$0x11]  ;;  %v3034_v56 = vld [vmem:[%s2914_s6 + $0x4] ss:$12 sps:$4 sm:$0xff]   ;;  %v3051_v0 = vld [vmem:[%s2914_s6] ss:$12 sps:$4 sm:$0xff]  }
  0x1e   : > { %730 = vmatprep.subr.bf16.mxu0 %v2541_v25  ;;  %809 = vmatpush1.bf16.msra.mxu1 %v2538_v28  ;;  %v3036_v57 = vcombine.high %v149_v54, %v149_v54  ;;  %v2582_v58 = vld [vmem:[%s3615_s1 + $0x42c] ss:$16 sps:$4 sm:$0xff]   ;;  %v331_v59 = vshrl.u32 %v3034_v56, 16  ;;  %v333_v60 = vshll.u32 %v3034_v56, 16  ;;  %v2580_v62 = vld [vmem:[%s3615_s1 + $0x428] ss:$16 sps:$4 sm:$0xff]   ;;  %v3065_v9 = vcombine.low %v149_v54, %v149_v54 }
  0x1f   : > { %810 = vmatprep.subr.bf16.mxu1 %v2546_v31  ;;  %v2585_v63 = vld [vmem:[%s3615_s1 + $0x3a0] ss:$16 sps:$4 sm:$0xff]   ;;  %v2589_v1 = vld [vmem:[%s3615_s1 + $0x384] ss:$16 sps:$4 sm:$0xff]   ;;  %v2588_v5 = vld [vmem:[%s3615_s1 + $0x40c] ss:$16 sps:$4 sm:$0xff]  }
  0x20   : > { %v338_v61 = vshll.u32 %v3036_v57, 16  ;;  %v335_v3 = vrot.slane %v333_v60, 1  ;;  %v2586_v7 = vld [vmem:[%s3615_s1 + $0x408] ss:$16 sps:$4 sm:$0xff]   ;;  %v2591_v8 = vld [vmem:[%s3615_s1 + $0x380] ss:$16 sps:$4 sm:$0xff]  }
  0x21   : > { %731 = vmatpush1.bf16.msra.mxu0 %v2543_v29  ;;  %v321_v10 = vshll.u32 %v3051_v0, 16  ;;  %v2595_v11 = vld [vmem:[%s3615_s1 + $0x364] ss:$16 sps:$4 sm:$0xff]   ;;  %v2594_v14 = vld [vmem:[%s3615_s1 + $0x3ec] ss:$16 sps:$4 sm:$0xff]   ;;  %v319_v17 = vshrl.u32 %v3051_v0, 16 }
  0x22   : > { %732 = vmatprep.subr.bf16.mxu0 %v2547_v30  ;;  %811 = vmatpush1.bf16.msra.mxu1 %v2544_v32  ;;  %v340_v4 = vrot.slane %v338_v61, 1  ;;  %v336_v6 = vor.u32 %v335_v3, %v331_v59  ;;  %v2592_v15 = vld [vmem:[%s3615_s1 + $0x3e8] ss:$16 sps:$4 sm:$0xff]   ;;  %v2597_v16 = vld [vmem:[%s3615_s1 + $0x360] ss:$16 sps:$4 sm:$0xff]   ;;  %v326_v19 = vshll.u32 %v3065_v9, 16 }
  0x23   : > { %812 = vmatprep.subr.bf16.mxu1 %v2552_v35  ;;  %v323_v18 = vrot.slane %v321_v10, 1  ;;  %v2601_v20 = vld [vmem:[%s3615_s1 + $0x344] ss:$16 sps:$4 sm:$0xff]   ;;  %v2600_v21 = vld [vmem:[%s3615_s1 + $0x3cc] ss:$16 sps:$4 sm:$0xff]  }
  0x24   : > { %v341_v12 = vsel %vm317_vm0, %v336_v6, %v340_v4  ;;  %v2598_v22 = vld [vmem:[%s3615_s1 + $0x3c8] ss:$16 sps:$4 sm:$0xff]   ;;  %v2603_v23 = vld [vmem:[%s3615_s1 + $0x340] ss:$16 sps:$4 sm:$0xff]   ;;  %v328_v25 = vrot.slane %v326_v19, 1 }
  0x25   : > { %733 = vmatpush1.bf16.msra.mxu0 %v2549_v33  ;;  %752 = vmatprep.mubr.bf16.mxu0 %v341_v12  ;;  %v324_v24 = vor.u32 %v323_v18, %v319_v17  ;;  %v2614_v26 = vld [vmem:[%s3615_s1 + $0x46c] ss:$16 sps:$4 sm:$0xff]   ;;  %v2604_v29 = vld [vmem:[%s3615_s1 + $0x3a8] ss:$16 sps:$4 sm:$0xff]   ;;  %v2656_v59 = vld [vmem:[%s3615_s1 + $0x44] ss:$16 sps:$4 sm:$0xff]  }
  0x26   : > { %734 = vmatprep.subr.bf16.mxu0 %v2553_v34  ;;  %813 = vmatpush1.bf16.msra.mxu1 %v2550_v36  ;;  %v2606_v28 = vld [vmem:[%s3615_s1 + $0x3ac] ss:$16 sps:$4 sm:$0xff]   ;;  %v2612_v31 = vld [vmem:[%s3615_s1 + $0x468] ss:$16 sps:$4 sm:$0xff]   ;;  %v2626_v36 = vld [vmem:[%s3615_s1 + $0xe4] ss:$16 sps:$4 sm:$0xff]  }
  0x27   : > { %814 = vmatprep.subr.bf16.mxu1 %v2558_v39  ;;  %838 = vmatprep.mubr.bf16.mxu1 %v341_v12  ;;  %v329_v30 = vsel %vm317_vm0, %v324_v24, %v328_v25  ;;  %v2620_v32 = vld [vmem:[%s3615_s1 + $0x44c] ss:$16 sps:$4 sm:$0xff]   ;;  %v2615_v34 = vld [vmem:[%s3615_s1 + $0x388] ss:$16 sps:$4 sm:$0xff]   ;;  %v2624_v39 = vld [vmem:[%s3615_s1 + $0xe0] ss:$16 sps:$4 sm:$0xff]  }
  0x28   : > { %v2617_v33 = vld [vmem:[%s3615_s1 + $0x38c] ss:$16 sps:$4 sm:$0xff]   ;;  %v2618_v35 = vld [vmem:[%s3615_s1 + $0x448] ss:$16 sps:$4 sm:$0xff]   ;;  %v2660_v3 = vld [vmem:[%s3615_s1 + $0x20] ss:$16 sps:$4 sm:$0xff]  }
  0x29   : > { %735 = vmatpush1.bf16.msra.mxu0 %v2555_v37  ;;  %v2623_v37 = vld [vmem:[%s3615_s1 + $0x36c] ss:$16 sps:$4 sm:$0xff]   ;;  %v2651_v61 = vld [vmem:[%s3615_s1 + $0xc8] ss:$16 sps:$4 sm:$0xff]   ;;  %v2668_v4 = vld [vmem:[%s3615_s1 + $0x4] ss:$16 sps:$4 sm:$0xff]  }
  0x2a   : > { %736 = vmatprep.subr.bf16.mxu0 %v2559_v38  ;;  %815 = vmatpush1.bf16.msra.mxu1 %v2556_v40  ;;  %v2621_v38 = vld [vmem:[%s3615_s1 + $0x368] ss:$16 sps:$4 sm:$0xff]   ;;  %v2632_v40 = vld [vmem:[%s3615_s1 + $0xc4] ss:$16 sps:$4 sm:$0xff]   ;;  %v2647_v54 = vld [vmem:[%s3615_s1 + $0xec] ss:$16 sps:$4 sm:$0xff]  }
  0x2b   : > { %816 = vmatprep.subr.bf16.mxu1 %v2564_v43  ;;  %v2630_v43 = vld [vmem:[%s3615_s1 + $0xc0] ss:$16 sps:$4 sm:$0xff]   ;;  %v2653_v60 = vld [vmem:[%s3615_s1 + $0xcc] ss:$16 sps:$4 sm:$0xff]   ;;  %v2669_v10 = vld [vmem:[%s3615_s1 + $0x68] ss:$16 sps:$4 sm:$0xff]  }
  0x2c   : > { %v2666_v6 = vld [vmem:[%s3615_s1] ss:$16 sps:$4 sm:$0xff]   ;;  %v2680_v12 = vld [vmem:[%s3615_s1 + $0x1c4] ss:$16 sps:$4 sm:$0xff]   ;;  %v2683_v18 = vld [vmem:[%s3615_s1 + $0x2c] ss:$16 sps:$4 sm:$0xff]  }
  0x2d   : > { %737 = vmatpush2.bf16.msra.mxu0 %v2561_v41  ;;  %v2629_v41 = vld [vmem:[%s3615_s1 + $0x34c] ss:$16 sps:$4 sm:$0xff]   ;;  %v2686_v17 = vld [vmem:[%s3615_s1 + $0x1a4] ss:$16 sps:$4 sm:$0xff]   ;;  %v2681_v19 = vld [vmem:[%s3615_s1 + $0x28] ss:$16 sps:$4 sm:$0xff]  }
  0x2e   : > { %738 = vmatprep.subr.bf16.mxu0 %v2565_v42  ;;  %817 = vmatpush1.bf16.msra.mxu1 %v2562_v44  ;;  %v2627_v42 = vld [vmem:[%s3615_s1 + $0x348] ss:$16 sps:$4 sm:$0xff]   ;;  %v2638_v44 = vld [vmem:[%s3615_s1 + $0xa4] ss:$16 sps:$4 sm:$0xff]   ;;  %v2690_v24 = vld [vmem:[%s3615_s1 + $0x180] ss:$16 sps:$4 sm:$0xff]  }
  0x2f   : > { %818 = vmatprep.subr.bf16.mxu1 %v2570_v47  ;;  %v2644_v47 = vld [vmem:[%s3615_s1 + $0x84] ss:$16 sps:$4 sm:$0xff]  }
  0x30   : > { %v2698_v25 = vld [vmem:[%s3615_s1 + $0x164] ss:$16 sps:$4 sm:$0xff]  }
  0x31   : > { %739 = vmatpush2.bf16.msra.mxu0 %v2567_v45  ;;  %v2633_v45 = vld [vmem:[%s3615_s1 + $0x220] ss:$16 sps:$4 sm:$0xff]  }
  0x32   : > { %740 = vmatprep.subr.bf16.mxu0 %v2571_v46  ;;  %819 = vmatpush1.bf16.msra.mxu1 %v2568_v48  ;;  %v2636_v46 = vld [vmem:[%s3615_s1 + $0xa0] ss:$16 sps:$4 sm:$0xff]   ;;  %v2641_v48 = vld [vmem:[%s3615_s1 + $0x204] ss:$16 sps:$4 sm:$0xff]  }
  0x33   : > { %820 = vmatprep.subr.bf16.mxu1 %v2576_v51  ;;  %v2642_v51 = vld [vmem:[%s3615_s1 + $0x80] ss:$16 sps:$4 sm:$0xff]  }
  0x35   : > { %741 = vmatpush2.bf16.msra.mxu0 %v2573_v49  ;;  %v1505_v49 = vrot.slane %v3034_v56, 1 }
  0x36   : > { %742 = vmatprep.subr.bf16.mxu0 %v2577_v50  ;;  %821 = vmatpush1.bf16.msra.mxu1 %v2574_v52  ;;  %v2639_v50 = vld [vmem:[%s3615_s1 + $0x200] ss:$16 sps:$4 sm:$0xff]   ;;  %v1506_v52 = vrot.slane %v3036_v57, 1  ;;  %v2645_v57 = vld [vmem:[%s3615_s1 + $0xe8] ss:$16 sps:$4 sm:$0xff]  }
  0x37   : > { %822 = vmatprep.subr.bf16.mxu1 %v2582_v58  ;;  %v2648_v58 = vld [vmem:[%s3615_s1 + $0x60] ss:$16 sps:$4 sm:$0xff]  }
  0x39   : > { %743 = vmatpush2.bf16.msra.mxu0 %v2579_v53  ;;  %v2650_v53 = vld [vmem:[%s3615_s1 + $0x64] ss:$16 sps:$4 sm:$0xff]  }
  0x3a   : > { %744 = vmatprep.subr.bf16.mxu0 %v2583_v55  ;;  %823 = vmatpush2.bf16.msra.mxu1 %v2580_v62  ;;  %v3182_v55 = vsel %vm1501_vm2, %v1505_v49, %v1506_v52  ;;  %v2654_v62 = vld [vmem:[%s3615_s1 + $0x40] ss:$16 sps:$4 sm:$0xff]   ;;  %v2734_v49 = vld [vmem:[%s3615_s1 + $0x564] ss:$16 sps:$4 sm:$0xff]  }
  0x3b   : > { %824 = vmatprep.subr.bf16.mxu1 %v2588_v5  ;;  %v2663_v5 = vld [vmem:[%s3615_s1 + $0x88] ss:$16 sps:$4 sm:$0xff]   ;;  %v2732_v52 = vld [vmem:[%s3615_s1 + $0x560] ss:$16 sps:$4 sm:$0xff]  }
  0x3d   : > { %745 = vmatpush2.bf16.msra.mxu0 %v2585_v63  ;;  %v2662_v63 = vld [vmem:[%s3615_s1 + $0x24] ss:$16 sps:$4 sm:$0xff]  }
  0x3e   : > { %746 = vmatprep.subr.bf16.mxu0 %v2589_v1  ;;  %825 = vmatpush2.bf16.msra.mxu1 %v2586_v7  ;;  %v2657_v1 = vld [vmem:[%s3615_s1 + $0xa8] ss:$16 sps:$4 sm:$0xff]   ;;  %v2674_v7 = vld [vmem:[%s3615_s1 + $0x1e4] ss:$16 sps:$4 sm:$0xff]  }
  0x3f   : > { %826 = vmatprep.subr.bf16.mxu1 %v2594_v14  ;;  %v2677_v14 = vld [vmem:[%s3615_s1 + $0x4c] ss:$16 sps:$4 sm:$0xff]  }
  0x41   : > { %747 = vmatpush2.bf16.msra.mxu0 %v2591_v8  ;;  %v2671_v8 = vld [vmem:[%s3615_s1 + $0x6c] ss:$16 sps:$4 sm:$0xff]  }
  0x42   : > { %748 = vmatprep.subr.bf16.mxu0 %v2595_v11  ;;  %827 = vmatpush2.bf16.msra.mxu1 %v2592_v15  ;;  %v2672_v11 = vld [vmem:[%s3615_s1 + $0x1e0] ss:$16 sps:$4 sm:$0xff]   ;;  %v2675_v15 = vld [vmem:[%s3615_s1 + $0x48] ss:$16 sps:$4 sm:$0xff]  }
  0x43   : > { %828 = vmatprep.subr.bf16.mxu1 %v2600_v21  ;;  %v2692_v21 = vld [vmem:[%s3615_s1 + $0x184] ss:$16 sps:$4 sm:$0xff]  }
  0x45   : > { %749 = vmatpush2.bf16.msra.mxu0 %v2597_v16  ;;  %v2678_v16 = vld [vmem:[%s3615_s1 + $0x1c0] ss:$16 sps:$4 sm:$0xff]  }
  0x46   : > { %750 = vmatprep.subr.bf16.mxu0 %v2601_v20  ;;  %829 = vmatpush2.bf16.msra.mxu1 %v2598_v22  ;;  %v2684_v20 = vld [vmem:[%s3615_s1 + $0x1a0] ss:$16 sps:$4 sm:$0xff]   ;;  %v2689_v22 = vld [vmem:[%s3615_s1 + $0xc] ss:$16 sps:$4 sm:$0xff]  }
  0x47   : > { %830 = vmatprep.subr.bf16.mxu1 %v2606_v28  ;;  %v2693_v28 = vld [vmem:[%s3615_s1 + $0x1e8] ss:$16 sps:$4 sm:$0xff]  }
  0x49   : > { %751 = vmatpush2.bf16.msra.mxu0 %v2603_v23  ;;  %v2687_v23 = vld [vmem:[%s3615_s1 + $0x8] ss:$16 sps:$4 sm:$0xff]  }
  0x4a   : > { %861 = vmatprep.subr.bf16.mxu0 %v2614_v26  ;;  %831 = vmatpush2.bf16.msra.mxu1 %v2604_v29  ;;  %v2695_v26 = vld [vmem:[%s3615_s1 + $0x1ec] ss:$16 sps:$4 sm:$0xff]   ;;  %v2696_v29 = vld [vmem:[%s3615_s1 + $0x160] ss:$16 sps:$4 sm:$0xff]  }
  0x4b   : > { %832 = vmatprep.subr.bf16.mxu1 %v2617_v33  ;;  %v2702_v33 = vld [vmem:[%s3615_s1 + $0x140] ss:$16 sps:$4 sm:$0xff]  }
  0x4c   : > { %753 = vmatmul.mubr.bf16.vlgmr.msra.gmra.mxu0 %v329_v30 }
  0x4d   : > { %862 = vmatpush1.bf16.msra.mxu0 %v2612_v31  ;;  %881 = vmatprep.mubr.bf16.mxu0 %v2853_v2  ;;  %v2701_v31 = vld [vmem:[%s3615_s1 + $0x1cc] ss:$16 sps:$4 sm:$0xff]  }
  0x4e   : > { %863 = vmatprep.subr.bf16.mxu0 %v2620_v32  ;;  %833 = vmatpush2.bf16.msra.mxu1 %v2615_v34  ;;  %v2699_v32 = vld [vmem:[%s3615_s1 + $0x1c8] ss:$16 sps:$4 sm:$0xff]   ;;  %v2710_v34 = vld [vmem:[%s3615_s1 + $0x124] ss:$16 sps:$4 sm:$0xff]  }
  0x4f   : > { %834 = vmatprep.subr.bf16.mxu1 %v2623_v37  ;;  %v2708_v37 = vld [vmem:[%s3615_s1 + $0x120] ss:$16 sps:$4 sm:$0xff]  }
  0x51   : > { %864 = vmatpush1.bf16.msra.mxu0 %v2618_v35  ;;  %v2707_v35 = vld [vmem:[%s3615_s1 + $0x1ac] ss:$16 sps:$4 sm:$0xff]  }
  0x52   : > { %1256 = vmatprep.subr.bf16.mxu0 %v2626_v36  ;;  %835 = vmatpush2.bf16.msra.mxu1 %v2621_v38  ;;  %v2705_v36 = vld [vmem:[%s3615_s1 + $0x1a8] ss:$16 sps:$4 sm:$0xff]   ;;  %v2716_v38 = vld [vmem:[%s3615_s1 + $0x104] ss:$16 sps:$4 sm:$0xff]  }
  0x53   : > { %836 = vmatprep.subr.bf16.mxu1 %v2629_v41  ;;  %v2714_v41 = vld [vmem:[%s3615_s1 + $0x100] ss:$16 sps:$4 sm:$0xff]  }
  0x54   : > { %2278 = vmatmul.mubr.msk.bf16.vlgmr.msra.gmra.mxu0 %vm716_vm1, %v2947_v27  ;;  %v2635_v27 = vld [vmem:[%s3615_s1 + $0x224] ss:$16 sps:$4 sm:$0xff]  }
  0x55   : > { %1257 = vmatpush1.bf16.msra.mxu0 %v2624_v39  ;;  %1288 = vmatprep.mubr.bf16.mxu0 %v3034_v56  ;;  %v2713_v39 = vld [vmem:[%s3615_s1 + $0x18c] ss:$16 sps:$4 sm:$0xff]  }
  0x56   : > { %1258 = vmatprep.subr.bf16.mxu0 %v2632_v40  ;;  %837 = vmatpush2.bf16.msra.mxu1 %v2627_v42  ;;  %v2711_v40 = vld [vmem:[%s3615_s1 + $0x188] ss:$16 sps:$4 sm:$0xff]   ;;  %v2722_v42 = vld [vmem:[%s3615_s1 + $0x22c] ss:$16 sps:$4 sm:$0xff]  }
  0x57   : > { %1311 = vmatprep.subr.bf16.mxu1 %v2635_v27  ;;  %v2720_v27 = vld [vmem:[%s3615_s1 + $0x228] ss:$16 sps:$4 sm:$0xff]  }
  0x59   : > { %1259 = vmatpush1.bf16.msra.mxu0 %v2630_v43  ;;  %839 = vmatmul.mubr.bf16.vlgmr.msra.gmra.mxu1 %v329_v30  ;;  %v2704_v30 = vld [vmem:[%s3615_s1 + $0x144] ss:$16 sps:$4 sm:$0xff]   ;;  %v2719_v43 = vld [vmem:[%s3615_s1 + $0x16c] ss:$16 sps:$4 sm:$0xff]  }
  0x5a   : > { %1260 = vmatprep.subr.bf16.mxu0 %v2638_v44  ;;  %1312 = vmatpush1.bf16.msra.mxu1 %v2633_v45  ;;  %v2717_v44 = vld [vmem:[%s3615_s1 + $0x168] ss:$16 sps:$4 sm:$0xff]   ;;  %v2728_v45 = vld [vmem:[%s3615_s1 + $0x20c] ss:$16 sps:$4 sm:$0xff]  }
  0x5b   : > { %1313 = vmatprep.subr.bf16.mxu1 %v2641_v48  ;;  %1331 = vmatprep.mubr.bf16.mxu1 %v2853_v2  ;;  %v2726_v48 = vld [vmem:[%s3615_s1 + $0x208] ss:$16 sps:$4 sm:$0xff]  }
  0x5d   : > { %1261 = vmatpush1.bf16.msra.mxu0 %v2636_v46  ;;  %v2725_v46 = vld [vmem:[%s3615_s1 + $0x14c] ss:$16 sps:$4 sm:$0xff]  }
  0x5e   : > { %1262 = vmatprep.subr.bf16.mxu0 %v2644_v47  ;;  %1314 = vmatpush1.bf16.msra.mxu1 %v2639_v50  ;;  %v2723_v47 = vld [vmem:[%s3615_s1 + $0x148] ss:$16 sps:$4 sm:$0xff]   ;;  %v2731_v50 = vld [vmem:[%s3615_s1 + $0x12c] ss:$16 sps:$4 sm:$0xff]  }
  0x5f   : > { %1342 = vmatprep.subr.bf16.mxu1 %v2647_v54  ;;  %v2737_v54 = vld [vmem:[%s3615_s1 + $0x10c] ss:$16 sps:$4 sm:$0xff]  }
  0x61   : > { %1263 = vmatpush1.bf16.msra.mxu0 %v2642_v51  ;;  %2351 = vmatmul.mubr.msk.bf16.vlgmr.msra.gmra.mxu1 %vm716_vm1, %v2923_v13  ;;  %v2659_v13 = vld [vmem:[%s3615_s1 + $0xac] ss:$16 sps:$4 sm:$0xff]   ;;  %v2729_v51 = vld [vmem:[%s3615_s1 + $0x128] ss:$16 sps:$4 sm:$0xff]  }
  0x62   : > { %1264 = vmatprep.subr.bf16.mxu0 %v2650_v53  ;;  %1343 = vmatpush1.bf16.msra.mxu1 %v2645_v57  ;;  %v2740_v53 = vld [vmem:[%s3615_s1 + $0x544] ss:$16 sps:$4 sm:$0xff]  }
  0x63   : > { %1344 = vmatprep.subr.bf16.mxu1 %v2653_v60  ;;  %1374 = vmatprep.mubr.bf16.mxu1 %v3034_v56  ;;  %v2665_v56 = vld [vmem:[%s3615_s1 + $0x8c] ss:$16 sps:$4 sm:$0xff]   ;;  %v2843_v57 = vld [vmem:[%s2914_s6 + $0x8] ss:$12 sps:$4 sm:$0xff]  }
  0x64   : > { %v2746_v60 = vld [vmem:[%s3615_s1 + $0x524] ss:$16 sps:$4 sm:$0xff]  }
  0x65   : > { %1265 = vmatpush1.bf16.msra.mxu0 %v2648_v58  ;;  %v2738_v58 = vld [vmem:[%s3615_s1 + $0x540] ss:$16 sps:$4 sm:$0xff]  }
  0x66   : > { %1266 = vmatprep.subr.bf16.mxu0 %v2656_v59  ;;  %1345 = vmatpush1.bf16.msra.mxu1 %v2651_v61  ;;  %v2735_v59 = vld [vmem:[%s3615_s1 + $0x108] ss:$16 sps:$4 sm:$0xff]   ;;  %v2743_v61 = vld [vmem:[%s3615_s1 + $0x6a4] ss:$16 sps:$4 sm:$0xff]  }
  0x67   : > { %1346 = vmatprep.subr.bf16.mxu1 %v2659_v13  ;;  %v2752_v13 = vld [vmem:[%s3615_s1 + $0x504] ss:$16 sps:$4 sm:$0xff]  }
  0x69   : > { %1267 = vmatpush1.bf16.msra.mxu0 %v2654_v62  ;;  %v2744_v62 = vld [vmem:[%s3615_s1 + $0x520] ss:$16 sps:$4 sm:$0xff]  }
  0x6a   : > { %1268 = vmatprep.subr.bf16.mxu0 %v2662_v63  ;;  %1347 = vmatpush1.bf16.msra.mxu1 %v2657_v1  ;;  %v2741_v63 = vld [vmem:[%s3615_s1 + $0x6a0] ss:$16 sps:$4 sm:$0xff]   ;;  %v2749_v1 = vld [vmem:[%s3615_s1 + $0x684] ss:$16 sps:$4 sm:$0xff]  }
  0x6b   : > { %1348 = vmatprep.subr.bf16.mxu1 %v2665_v56  ;;  %v1508_v56 = vrot.slane %v2843_v57, 1 }
  0x6d   : > { %1269 = vmatpush1.bf16.msra.mxu0 %v2660_v3  ;;  %v2750_v3 = vld [vmem:[%s3615_s1 + $0x500] ss:$16 sps:$4 sm:$0xff]  }
  0x6e   : > { %1270 = vmatprep.subr.bf16.mxu0 %v2668_v4  ;;  %1349 = vmatpush1.bf16.msra.mxu1 %v2663_v5  ;;  %v2747_v4 = vld [vmem:[%s3615_s1 + $0x680] ss:$16 sps:$4 sm:$0xff]  }
  0x6f   : > { %1350 = vmatprep.subr.bf16.mxu1 %v2671_v8  ;;  %v2844_v5 = vld [vmem:[%s2914_s6 + $0x20] ss:$0 sps:$4 sm:$0x11]   ;;  %v2755_v8 = vld [vmem:[%s3615_s1 + $0x56c] ss:$16 sps:$4 sm:$0xff]  }
  0x71   : > { %1271 = vmatpush1.bf16.msra.mxu0 %v2666_v6  ;;  %v1509_v6 = vrot.slane %v2844_v5, 1  ;;  %v2837_v5 = vld [vmem:[%s3615_s1 + $0x5a8] ss:$16 sps:$4 sm:$0xff]  }
  0x72   : > { %1272 = vmatprep.subr.bf16.mxu0 %v2674_v7  ;;  %1351 = vmatpush1.bf16.msra.mxu1 %v2669_v10  ;;  %v2758_v7 = vld [vmem:[%s3615_s1 + $0x4e4] ss:$16 sps:$4 sm:$0xff]   ;;  %v2756_v10 = vld [vmem:[%s3615_s1 + $0x4e0] ss:$16 sps:$4 sm:$0xff]  }
  0x73   : > { %1352 = vmatprep.subr.bf16.mxu1 %v2677_v14  ;;  %v2764_v14 = vld [vmem:[%s3615_s1 + $0x4c4] ss:$16 sps:$4 sm:$0xff]  }
  0x75   : > { %1273 = vmatpush2.bf16.msra.mxu0 %v2672_v11  ;;  %v3415_v11 = vsel %vm1501_vm2, %v1508_v56, %v1509_v6  ;;  %v2839_v56 = vld [vmem:[%s3615_s1 + $0x5ac] ss:$16 sps:$4 sm:$0xff]   ;;  %v2840_v6 = vld [vmem:[%s3615_s1 + $0x588] ss:$16 sps:$4 sm:$0xff]  }
  0x76   : > { %1274 = vmatprep.subr.bf16.mxu0 %v2680_v12  ;;  %1353 = vmatpush1.bf16.msra.mxu1 %v2675_v15  ;;  %v2753_v12 = vld [vmem:[%s3615_s1 + $0x568] ss:$16 sps:$4 sm:$0xff]   ;;  %v2761_v15 = vld [vmem:[%s3615_s1 + $0x54c] ss:$16 sps:$4 sm:$0xff]  }
  0x77   : > { %1354 = vmatprep.subr.bf16.mxu1 %v2683_v18  ;;  %v2770_v18 = vld [vmem:[%s3615_s1 + $0x4a4] ss:$16 sps:$4 sm:$0xff]  }
  0x79   : > { %1275 = vmatpush2.bf16.msra.mxu0 %v2678_v16  ;;  %v2762_v16 = vld [vmem:[%s3615_s1 + $0x4c0] ss:$16 sps:$4 sm:$0xff]  }
  0x7a   : > { %1276 = vmatprep.subr.bf16.mxu0 %v2686_v17  ;;  %1355 = vmatpush1.bf16.msra.mxu1 %v2681_v19  ;;  %v2759_v17 = vld [vmem:[%s3615_s1 + $0x548] ss:$16 sps:$4 sm:$0xff]   ;;  %v2767_v19 = vld [vmem:[%s3615_s1 + $0x52c] ss:$16 sps:$4 sm:$0xff]  }
  0x7b   : > { %1356 = vmatprep.subr.bf16.mxu1 %v2689_v22  ;;  %v2776_v22 = vld [vmem:[%s3615_s1 + $0x484] ss:$16 sps:$4 sm:$0xff]  }
  0x7d   : > { %1277 = vmatpush2.bf16.msra.mxu0 %v2684_v20  ;;  %v2768_v20 = vld [vmem:[%s3615_s1 + $0x4a0] ss:$16 sps:$4 sm:$0xff]  }
  0x7e   : > { %1278 = vmatprep.subr.bf16.mxu0 %v2692_v21  ;;  %1357 = vmatpush1.bf16.msra.mxu1 %v2687_v23  ;;  %v2765_v21 = vld [vmem:[%s3615_s1 + $0x528] ss:$16 sps:$4 sm:$0xff]   ;;  %v2774_v23 = vld [vmem:[%s3615_s1 + $0x480] ss:$16 sps:$4 sm:$0xff]  }
  0x7f   : > { %1358 = vmatprep.subr.bf16.mxu1 %v2695_v26  ;;  %v2779_v26 = vld [vmem:[%s3615_s1 + $0x4ec] ss:$16 sps:$4 sm:$0xff]  }
  0x81   : > { %1279 = vmatpush2.bf16.msra.mxu0 %v2690_v24  ;;  %v2771_v24 = vld [vmem:[%s3615_s1 + $0x508] ss:$16 sps:$4 sm:$0xff]  }
  0x82   : > { %1280 = vmatprep.subr.bf16.mxu0 %v2698_v25  ;;  %1359 = vmatpush2.bf16.msra.mxu1 %v2693_v28  ;;  %v2782_v25 = vld [vmem:[%s3615_s1 + $0x664] ss:$16 sps:$4 sm:$0xff]   ;;  %v2780_v28 = vld [vmem:[%s3615_s1 + $0x660] ss:$16 sps:$4 sm:$0xff]  }
  0x83   : > { %1360 = vmatprep.subr.bf16.mxu1 %v2701_v31  ;;  %v2785_v31 = vld [vmem:[%s3615_s1 + $0x4cc] ss:$16 sps:$4 sm:$0xff]  }
  0x85   : > { %1281 = vmatpush2.bf16.msra.mxu0 %v2696_v29  ;;  %v2777_v29 = vld [vmem:[%s3615_s1 + $0x4e8] ss:$16 sps:$4 sm:$0xff]  }
  0x86   : > { %1282 = vmatprep.subr.bf16.mxu0 %v2704_v30  ;;  %1361 = vmatpush2.bf16.msra.mxu1 %v2699_v32  ;;  %v2788_v30 = vld [vmem:[%s3615_s1 + $0x644] ss:$16 sps:$4 sm:$0xff]   ;;  %v2786_v32 = vld [vmem:[%s3615_s1 + $0x640] ss:$16 sps:$4 sm:$0xff]  }
  0x87   : > { %1362 = vmatprep.subr.bf16.mxu1 %v2707_v35  ;;  %v2791_v35 = vld [vmem:[%s3615_s1 + $0x4ac] ss:$16 sps:$4 sm:$0xff]  }
  0x89   : > { %1283 = vmatpush2.bf16.msra.mxu0 %v2702_v33  ;;  %v2783_v33 = vld [vmem:[%s3615_s1 + $0x4c8] ss:$16 sps:$4 sm:$0xff]  }
  0x8a   : > { %1284 = vmatprep.subr.bf16.mxu0 %v2710_v34  ;;  %1363 = vmatpush2.bf16.msra.mxu1 %v2705_v36  ;;  %v2794_v34 = vld [vmem:[%s3615_s1 + $0x624] ss:$16 sps:$4 sm:$0xff]   ;;  %v2792_v36 = vld [vmem:[%s3615_s1 + $0x620] ss:$16 sps:$4 sm:$0xff]  }
  0x8b   : > { %1364 = vmatprep.subr.bf16.mxu1 %v2713_v39  ;;  %v2797_v39 = vld [vmem:[%s3615_s1 + $0x48c] ss:$16 sps:$4 sm:$0xff]  }
  0x8d   : > { %1285 = vmatpush2.bf16.msra.mxu0 %v2708_v37  ;;  %v2789_v37 = vld [vmem:[%s3615_s1 + $0x4a8] ss:$16 sps:$4 sm:$0xff]  }
  0x8e   : > { %1286 = vmatprep.subr.bf16.mxu0 %v2716_v38  ;;  %1365 = vmatpush2.bf16.msra.mxu1 %v2711_v40  ;;  %v2800_v38 = vld [vmem:[%s3615_s1 + $0x604] ss:$16 sps:$4 sm:$0xff]   ;;  %v2798_v40 = vld [vmem:[%s3615_s1 + $0x600] ss:$16 sps:$4 sm:$0xff]  }
  0x8f   : > { %1366 = vmatprep.subr.bf16.mxu1 %v2719_v43  ;;  %v2803_v43 = vld [vmem:[%s3615_s1 + $0x66c] ss:$16 sps:$4 sm:$0xff]  }
  0x91   : > { %1287 = vmatpush2.bf16.msra.mxu0 %v2714_v41  ;;  %v2795_v41 = vld [vmem:[%s3615_s1 + $0x488] ss:$16 sps:$4 sm:$0xff]  }
  0x92   : > { %1397 = vmatprep.subr.bf16.mxu0 %v2722_v42  ;;  %1367 = vmatpush2.bf16.msra.mxu1 %v2717_v44  ;;  %v2806_v42 = vld [vmem:[%s3615_s1 + $0x5e4] ss:$16 sps:$4 sm:$0xff]   ;;  %v2804_v44 = vld [vmem:[%s3615_s1 + $0x5e0] ss:$16 sps:$4 sm:$0xff]  }
  0x93   : > { %1368 = vmatprep.subr.bf16.mxu1 %v2725_v46  ;;  %v2809_v46 = vld [vmem:[%s3615_s1 + $0x64c] ss:$16 sps:$4 sm:$0xff]  }
  0x94   : > { %1289 = vmatmul.mubr.bf16.vlgmr.msra.gmra.mxu0 %v3051_v0 }
  0x95   : > { %1398 = vmatpush1.bf16.msra.mxu0 %v2720_v27  ;;  %1417 = vmatprep.mubr.bf16.mxu0 %v2853_v2  ;;  %v2801_v27 = vld [vmem:[%s3615_s1 + $0x668] ss:$16 sps:$4 sm:$0xff]  }
  0x96   : > { %1399 = vmatprep.subr.bf16.mxu0 %v2728_v45  ;;  %1369 = vmatpush2.bf16.msra.mxu1 %v2723_v47  ;;  %v2812_v45 = vld [vmem:[%s3615_s1 + $0x5c4] ss:$16 sps:$4 sm:$0xff]   ;;  %v2810_v47 = vld [vmem:[%s3615_s1 + $0x5c0] ss:$16 sps:$4 sm:$0xff]  }
  0x97   : > { %1370 = vmatprep.subr.bf16.mxu1 %v2731_v50  ;;  %v2815_v50 = vld [vmem:[%s3615_s1 + $0x62c] ss:$16 sps:$4 sm:$0xff]  }
  0x99   : > { %1400 = vmatpush1.bf16.msra.mxu0 %v2726_v48  ;;  %v2807_v48 = vld [vmem:[%s3615_s1 + $0x648] ss:$16 sps:$4 sm:$0xff]  }
  0x9a   : > { %1876 = vmatprep.subr.bf16.mxu0 %v2734_v49  ;;  %1371 = vmatpush2.bf16.msra.mxu1 %v2729_v51  ;;  %v2818_v49 = vld [vmem:[%s3615_s1 + $0x5a4] ss:$16 sps:$4 sm:$0xff]   ;;  %v2816_v51 = vld [vmem:[%s3615_s1 + $0x5a0] ss:$16 sps:$4 sm:$0xff]  }
  0x9b   : > { %1372 = vmatprep.subr.bf16.mxu1 %v2737_v54  ;;  %v2821_v54 = vld [vmem:[%s3615_s1 + $0x60c] ss:$16 sps:$4 sm:$0xff]  }
  0x9c   : > { %2352 = vmatmul.mubr.msk.bf16.vlgmr.msra.gmra.mxu0 %vm716_vm1, %v2843_v57  ;;  %v2822_v57 = vld [vmem:[%s3615_s1 + $0x580] ss:$16 sps:$4 sm:$0xff]  }
  0x9d   : > { %1877 = vmatpush1.bf16.msra.mxu0 %v2732_v52  ;;  %1908 = vmatprep.mubr.bf16.mxu0 %v3182_v55  ;;  %v2813_v52 = vld [vmem:[%s3615_s1 + $0x628] ss:$16 sps:$4 sm:$0xff]  }
  0x9e   : > { %1878 = vmatprep.subr.bf16.mxu0 %v2740_v53  ;;  %1373 = vmatpush2.bf16.msra.mxu1 %v2735_v59  ;;  %v2824_v53 = vld [vmem:[%s3615_s1 + $0x584] ss:$16 sps:$4 sm:$0xff]   ;;  %v1503_v59 = vrot.slane %v3065_v9, 1  ;;  %v2828_v9 = vld [vmem:[%s3615_s1 + $0x6a8] ss:$16 sps:$4 sm:$0xff]  }
  0x9f   : > { %1931 = vmatprep.subr.bf16.mxu1 %v2743_v61  ;;  %v2830_v61 = vld [vmem:[%s3615_s1 + $0x6ac] ss:$16 sps:$4 sm:$0xff]  }
  0xa1   : > { %1879 = vmatpush1.bf16.msra.mxu0 %v2738_v58  ;;  %1375 = vmatmul.mubr.bf16.vlgmr.msra.gmra.mxu1 %v3051_v0  ;;  %v1502_v58 = vrot.slane %v3051_v0, 1 }
  0xa2   : > { %1880 = vmatprep.subr.bf16.mxu0 %v2746_v60  ;;  %1932 = vmatpush1.bf16.msra.mxu1 %v2741_v63  ;;  %v2819_v60 = vld [vmem:[%s3615_s1 + $0x608] ss:$16 sps:$4 sm:$0xff]  }
  0xa3   : > { %1933 = vmatprep.subr.bf16.mxu1 %v2749_v1  ;;  %1951 = vmatprep.mubr.bf16.mxu1 %v2853_v2  ;;  %v1504_v0 = vsel %vm1501_vm2, %v1502_v58, %v1503_v59  ;;  %v2825_v63 = vld [vmem:[%s3615_s1 + $0x5e8] ss:$16 sps:$4 sm:$0xff]   ;;  %v2833_v1 = vld [vmem:[%s3615_s1 + $0x5cc] ss:$16 sps:$4 sm:$0xff]  }
  0xa5   : > { %1881 = vmatpush1.bf16.msra.mxu0 %v2744_v62  ;;  %v2827_v62 = vld [vmem:[%s3615_s1 + $0x5ec] ss:$16 sps:$4 sm:$0xff]  }
  0xa6   : > { %1882 = vmatprep.subr.bf16.mxu0 %v2752_v13  ;;  %1934 = vmatpush1.bf16.msra.mxu1 %v2747_v4  ;;  %v2836_v13 = vld [vmem:[%s3615_s1 + $0x68c] ss:$16 sps:$4 sm:$0xff]   ;;  %v2831_v4 = vld [vmem:[%s3615_s1 + $0x5c8] ss:$16 sps:$4 sm:$0xff]  }
  0xa7   : > { %1962 = vmatprep.subr.bf16.mxu1 %v2755_v8 }
  0xa9   : > { %1883 = vmatpush1.bf16.msra.mxu0 %v2750_v3  ;;  %2497 = vmatmul.mubr.msk.bf16.vlgmr.msra.gmra.mxu1 %vm716_vm1, %v3415_v11  ;;  %v2834_v3 = vld [vmem:[%s3615_s1 + $0x688] ss:$16 sps:$4 sm:$0xff]  }
  0xaa   : > { %1884 = vmatprep.subr.bf16.mxu0 %v2758_v7  ;;  %1963 = vmatpush1.bf16.msra.mxu1 %v2753_v12 }
  0xab   : > { %1964 = vmatprep.subr.bf16.mxu1 %v2761_v15  ;;  %1994 = vmatprep.mubr.bf16.mxu1 %v3182_v55  ;;  %v2773_v55 = vld [vmem:[%s3615_s1 + $0x50c] ss:$16 sps:$4 sm:$0xff]  }
  0xad   : > { %1885 = vmatpush1.bf16.msra.mxu0 %v2756_v10 }
  0xae   : > { %1886 = vmatprep.subr.bf16.mxu0 %v2764_v14  ;;  %1965 = vmatpush1.bf16.msra.mxu1 %v2759_v17 }
  0xaf   : > { %1966 = vmatprep.subr.bf16.mxu1 %v2767_v19 }
  0xb1   : > { %1887 = vmatpush1.bf16.msra.mxu0 %v2762_v16 }
  0xb2   : > { %1888 = vmatprep.subr.bf16.mxu0 %v2770_v18  ;;  %1967 = vmatpush1.bf16.msra.mxu1 %v2765_v21 }
  0xb3   : > { %1968 = vmatprep.subr.bf16.mxu1 %v2773_v55 }
  0xb5   : > { %1889 = vmatpush1.bf16.msra.mxu0 %v2768_v20 }
  0xb6   : > { %1890 = vmatprep.subr.bf16.mxu0 %v2776_v22  ;;  %1969 = vmatpush1.bf16.msra.mxu1 %v2771_v24 }
  0xb7   : > { %1970 = vmatprep.subr.bf16.mxu1 %v2779_v26 }
  0xb9   : > { %1891 = vmatpush1.bf16.msra.mxu0 %v2774_v23 }
  0xba   : > { %1892 = vmatprep.subr.bf16.mxu0 %v2782_v25  ;;  %1971 = vmatpush1.bf16.msra.mxu1 %v2777_v29 }
  0xbb   : > { %1972 = vmatprep.subr.bf16.mxu1 %v2785_v31 }
  0xbd   : > { %1893 = vmatpush2.bf16.msra.mxu0 %v2780_v28 }
  0xbe   : > { %1894 = vmatprep.subr.bf16.mxu0 %v2788_v30  ;;  %1973 = vmatpush1.bf16.msra.mxu1 %v2783_v33 }
  0xbf   : > { %1974 = vmatprep.subr.bf16.mxu1 %v2791_v35 }
  0xc1   : > { %1895 = vmatpush2.bf16.msra.mxu0 %v2786_v32 }
  0xc2   : > { %1896 = vmatprep.subr.bf16.mxu0 %v2794_v34  ;;  %1975 = vmatpush1.bf16.msra.mxu1 %v2789_v37 }
  0xc3   : > { %1976 = vmatprep.subr.bf16.mxu1 %v2797_v39 }
  0xc5   : > { %1897 = vmatpush2.bf16.msra.mxu0 %v2792_v36 }
  0xc6   : > { %1898 = vmatprep.subr.bf16.mxu0 %v2800_v38  ;;  %1977 = vmatpush1.bf16.msra.mxu1 %v2795_v41 }
  0xc7   : > { %1978 = vmatprep.subr.bf16.mxu1 %v2803_v43 }
  0xc9   : > { %1899 = vmatpush2.bf16.msra.mxu0 %v2798_v40 }
  0xca   : > { %1900 = vmatprep.subr.bf16.mxu0 %v2806_v42  ;;  %1979 = vmatpush2.bf16.msra.mxu1 %v2801_v27 }
  0xcb   : > { %1980 = vmatprep.subr.bf16.mxu1 %v2809_v46 }
  0xcd   : > { %1901 = vmatpush2.bf16.msra.mxu0 %v2804_v44 }
  0xce   : > { %1902 = vmatprep.subr.bf16.mxu0 %v2812_v45  ;;  %1981 = vmatpush2.bf16.msra.mxu1 %v2807_v48 }
  0xcf   : > { %1982 = vmatprep.subr.bf16.mxu1 %v2815_v50 }
  0xd1   : > { %1903 = vmatpush2.bf16.msra.mxu0 %v2810_v47 }
  0xd2   : > { %1904 = vmatprep.subr.bf16.mxu0 %v2818_v49  ;;  %1983 = vmatpush2.bf16.msra.mxu1 %v2813_v52 }
  0xd3   : > { %1984 = vmatprep.subr.bf16.mxu1 %v2821_v54 }
  0xd5   : > { %1905 = vmatpush2.bf16.msra.mxu0 %v2816_v51 }
  0xd6   : > { %1906 = vmatprep.subr.bf16.mxu0 %v2824_v53  ;;  %1985 = vmatpush2.bf16.msra.mxu1 %v2819_v60 }
  0xd7   : > { %1986 = vmatprep.subr.bf16.mxu1 %v2827_v62 }
  0xd9   : > { %1907 = vmatpush2.bf16.msra.mxu0 %v2822_v57  ;;  %v797_v7 = vpop.f32.mrf.mxu1 }
  0xda   : > { %2017 = vmatprep.subr.bf16.mxu0 %v2830_v61  ;;  %1987 = vmatpush2.bf16.msra.mxu1 %v2825_v63 }
  0xdb   : > { %1988 = vmatprep.subr.bf16.mxu1 %v2833_v1  ;;  %v799_v8 = vpop.f32.mrf.mxu1 }
  0xdc   : > { %1909 = vmatmul.mubr.bf16.vlgmr.msra.gmra.mxu0 %v1504_v0 }
  0xdd   : > { %2018 = vmatpush1.bf16.msra.mxu0 %v2828_v9  ;;  %2037 = vmatprep.mubr.bf16.mxu0 %v2853_v2  ;;  %v2842_v2 = vld [vmem:[%s3615_s1 + $0x58c] ss:$16 sps:$4 sm:$0xff]   ;;  %v801_v12 = vpop.f32.mrf.mxu1 }
  0xde   : > { %2019 = vmatprep.subr.bf16.mxu0 %v2836_v13  ;;  %1989 = vmatpush2.bf16.msra.mxu1 %v2831_v4 }
  0xdf   : > { %1990 = vmatprep.subr.bf16.mxu1 %v2839_v56  ;;  %v803_v15 = vpop.f32.mrf.mxu1 }
  0xe1   : > { %2020 = vmatpush1.bf16.msra.mxu0 %v2834_v3 }
  0xe2   : > { %1991 = vmatpush2.bf16.msra.mxu1 %v2837_v5 }
  0xe3   : > { %1992 = vmatprep.subr.bf16.mxu1 %v2842_v2 }
  0xe4   : > { %2498 = vmatmul.mubr.msk.bf16.vlgmr.msra.gmra.mxu0 %vm716_vm1, %v3415_v11 }
  0xe6   : > { %1993 = vmatpush2.bf16.msra.mxu1 %v2840_v6 }
  0xe9   : > { %1995 = vmatmul.mubr.bf16.vlgmr.msra.gmra.mxu1 %v1504_v0 }
 0x10c   : > { %v754_v10 = vpop.f32.mrf.mxu0 }
 0x10d   : > { %v798_v41 = vadd.f32 %v797_v7, %v754_v10 }
 0x10e   : > { %v756_v14 = vpop.f32.mrf.mxu0 }
 0x10f   : > { %v800_v42 = vadd.f32 %v799_v8, %v756_v14 }
 0x110   : > { %v758_v16 = vpop.f32.mrf.mxu0 }
 0x111   : > { %v802_v45 = vadd.f32 %v801_v12, %v758_v16 }
 0x112   : > { %v760_v18 = vpop.f32.mrf.mxu0 }
 0x113   : > { %v804_v48 = vadd.f32 %v803_v15, %v760_v18 }
 0x114   : > { %v883_v20 = vpop.f32.mrf.mxu0 }
 0x116   : > { %v885_v21 = vpop.f32.mrf.mxu0 }
 0x118   : > { %v887_v55 = vpop.f32.mrf.mxu0 }
 0x119   : > { %v840_v17 = vpop.f32.mrf.mxu1 }
 0x11a   : > { %v889_v24 = vpop.f32.mrf.mxu0  ;;  %v884_v5 = vadd.f32 %v883_v20, %v840_v17 }
 0x11b   : > { %v842_v19 = vpop.f32.mrf.mxu1 }
 0x11c   : > { %v886_v2 = vadd.f32 %v885_v21, %v842_v19 }
 0x11d   : > { %v844_v11 = vpop.f32.mrf.mxu1 }
 0x11e   : > { %v888_v8 = vadd.f32 %v887_v55, %v844_v11 }
 0x11f   : > { %v846_v22 = vpop.f32.mrf.mxu1 }
 0x120   : > { %v890_v14 = vadd.f32 %v889_v24, %v846_v22 }
 0x121   : > { %v1333_v23 = vpop.f32.mrf.mxu1 }
 0x123   : > { %v1335_v25 = vpop.f32.mrf.mxu1 }
 0x125   : > { %v1337_v28 = vpop.f32.mrf.mxu1 }
 0x127   : > { %v1339_v30 = vpop.f32.mrf.mxu1 }
 0x154   : > { %v1290_v26 = vpop.f32.mrf.mxu0 }
 0x155   : > { %v1291_v43 = vadd.f32 %v1290_v26, %v798_v41 }
 0x156   : > { %v1292_v29 = vpop.f32.mrf.mxu0 }
 0x157   : > { %v1293_v46 = vadd.f32 %v1292_v29, %v800_v42  ;;  %v1334_v49 = vadd.f32 %v1333_v23, %v1291_v43 }
 0x158   : > { %v1294_v31 = vpop.f32.mrf.mxu0 }
 0x159   : > { %v1295_v50 = vadd.f32 %v1294_v31, %v802_v45  ;;  %v1336_v54 = vadd.f32 %v1335_v25, %v1293_v46 }
 0x15a   : > { %v1296_v33 = vpop.f32.mrf.mxu0 }
 0x15b   : > { %v1297_v57 = vadd.f32 %v1296_v33, %v804_v48  ;;  %v1338_v61 = vadd.f32 %v1337_v28, %v1295_v50 }
 0x15c   : > { %v1419_v35 = vpop.f32.mrf.mxu0 }
 0x15d   : > { %v1340_v13 = vadd.f32 %v1339_v30, %v1297_v57 }
 0x15e   : > { %v1421_v37 = vpop.f32.mrf.mxu0 }
 0x160   : > { %v1423_v39 = vpop.f32.mrf.mxu0 }
 0x161   : > { %v1376_v32 = vpop.f32.mrf.mxu1 }
 0x162   : > { %v1425_v44 = vpop.f32.mrf.mxu0  ;;  %v1377_v6 = vadd.f32 %v1376_v32, %v884_v5 }
 0x163   : > { %v1378_v34 = vpop.f32.mrf.mxu1 }
 0x164   : > { %v1379_v10 = vadd.f32 %v1378_v34, %v886_v2  ;;  %v1420_v15 = vadd.f32 %v1419_v35, %v1377_v6 }
 0x165   : > { %v1380_v36 = vpop.f32.mrf.mxu1 }
 0x166   : > { %v1381_v16 = vadd.f32 %v1380_v36, %v888_v8  ;;  %v1422_v26 = vadd.f32 %v1421_v37, %v1379_v10 }
 0x167   : > { %v1382_v38 = vpop.f32.mrf.mxu1 }
 0x168   : > { %v1383_v28 = vadd.f32 %v1382_v38, %v890_v14  ;;  %v1424_v20 = vadd.f32 %v1423_v39, %v1381_v16 }
 0x169   : > { %v1953_v40 = vpop.f32.mrf.mxu1 }
 0x16a   : > { %v1426_v22 = vadd.f32 %v1425_v44, %v1383_v28 }
 0x16b   : > { %v1955_v27 = vpop.f32.mrf.mxu1 }
 0x16d   : > { %v1957_v52 = vpop.f32.mrf.mxu1 }
 0x16f   : > { %v1959_v9 = vpop.f32.mrf.mxu1 }
 0x19c   : > { %v1910_v47 = vpop.f32.mrf.mxu0 }
 0x19d   : > { %v1954_v51 = vadd.f32 %v1953_v40, %v1910_v47 }
 0x19e   : > { %v1912_v53 = vpop.f32.mrf.mxu0 }
 0x19f   : > { %v2048_v58 = vadd.f32 %v1954_v51, %v1334_v49  ;;  %v1956_v59 = vadd.f32 %v1955_v27, %v1912_v53 }
 0x1a0   : > { %v1914_v60 = vpop.f32.mrf.mxu0 }
 0x1a1   : > { %2056 = vst [vmem:[%s3601_s19] sm:$0xff] %v2048_v58  ;;  %v2049_v62 = vadd.f32 %v1956_v59, %v1336_v54  ;;  %v1958_v0 = vadd.f32 %v1957_v52, %v1914_v60 }
 0x1a2   : > { %v1916_v63 = vpop.f32.mrf.mxu0 }
 0x1a3   : > { %2057 = vst [vmem:[%s3601_s19 + $0x8] sm:$0xff] %v2049_v62  ;;  %v2052_v1 = vadd.f32 %v1958_v0, %v1338_v61  ;;  %v1960_v3 = vadd.f32 %v1959_v9, %v1916_v63 }
 0x1a4   : > { %v2039_v56 = vpop.f32.mrf.mxu0 }
 0x1a5   : > { %2060 = vst [vmem:[%s3601_s19 + $0x20] sm:$0xff] %v2052_v1  ;;  %v2053_v4 = vadd.f32 %v1960_v3, %v1340_v13 }
 0x1a6   : > { %v2041_v7 = vpop.f32.mrf.mxu0 }
 0x1a7   : > { %2061 = vst [vmem:[%s3601_s19 + $0x28] sm:$0xff] %v2053_v4 }
 0x1a8   : > { %v2043_v23 = vpop.f32.mrf.mxu0 }
 0x1a9   : > { %v1996_v12 = vpop.f32.mrf.mxu1 }
 0x1aa   : > { %v2040_v18 = vadd.f32 %v2039_v56, %v1996_v12  ;;  %v2045_v55 = vpop.f32.mrf.mxu0 }
 0x1ab   : > { %v1998_v25 = vpop.f32.mrf.mxu1 }
 0x1ac   : > { %v2050_v29 = vadd.f32 %v2040_v18, %v1420_v15  ;;  %v2042_v17 = vadd.f32 %v2041_v7, %v1998_v25 }
 0x1ad   : > { %v2000_v19 = vpop.f32.mrf.mxu1 }
 0x1ae   : > { %2058 = vst [vmem:[%s3601_s19 + $0x10] sm:$0xff] %v2050_v29  ;;  %v2051_v21 = vadd.f32 %v2042_v17, %v1422_v26  ;;  %v2044_v11 = vadd.f32 %v2043_v23, %v2000_v19 }
 0x1af   : > { %v2002_v30 = vpop.f32.mrf.mxu1 }
 0x1b0   : > { %2059 = vst [vmem:[%s3601_s19 + $0x18] sm:$0xff] %v2051_v21  ;;  %v2054_v24 = vadd.f32 %v2044_v11, %v1424_v20  ;;  %v2046_v31 = vadd.f32 %v2045_v55, %v2002_v30 }
 0x1b2   : > { %2062 = vst [vmem:[%s3601_s19 + $0x30] sm:$0xff] %v2054_v24  ;;  %v2055_v32 = vadd.f32 %v2046_v31, %v1426_v22 }
 0x1b4   : > { %2063 = vst [vmem:[%s3601_s19 + $0x38] sm:$0xff] %v2055_v32 }
 0x1b5 PF: > { %s12_s9 = sadd.s32 1, %s2851_s9  }
 0x1b6   : > { %p9_p4 = scmp.ge.s32.totalorder %s12_s9, 4  }
 0x1b8   :  { %11 = sbr.rel (!%p9_p4) target bundleno = 1 (0x1), region = 60 }

</bundles_post_ra>
